<compile_context>
chip_gen: v5e
topology: v5e:2x2
jax: 0.10.0
libtpu: 0.0.40
codegen_flags: <defaults>
</compile_context>

<pallas_src>
import functools

import jax
import jax.numpy as jnp
from jax.experimental import pallas as pl
from jax.experimental.pallas import tpu as pltpu

_LANES = 128
_SUBLANES = 8


def _round_up(n, m):
    return ((n + m - 1) // m) * m


def _vmem_capacity_bytes():
    try:
        return int(pltpu.get_tpu_info().vmem_capacity_bytes)
    except Exception:
        return 64 * 2 ** 20  # v7x floor; conservative for v5e/v6e


def _hopfield_energy_kernel(*refs, nudge):
    if nudge:
        (sc_ref, x_ref, h1_ref, h2_ref, y_ref, t_ref,
         w1_ref, w2t_ref, w3_ref, b1_ref, b2_ref, b3_ref, out_ref) = refs
    else:
        (sc_ref, x_ref, h1_ref, h2_ref, y_ref,
         w1_ref, w2t_ref, w3_ref, b1_ref, b2_ref, b3_ref, out_ref) = refs

    half_lam = 0.5 * sc_ref[0]  # SMEM scalar: no recompile when lam/beta change

    h1 = h1_ref[...]            # (TB, H1) f32
    h2 = h2_ref[...]            # (TB, H2) f32
    y = y_ref[...]              # (TB, OUT) f32
    # h2 is the MXU LHS of both remaining bilinear forms -> single cast.
    h2_lhs = h2.astype(w2t_ref.dtype)

    # Three compact MXU dots (x pre-cast to bf16 in the wrapper).
    p1 = jnp.dot(x_ref[...], w1_ref[...], preferred_element_type=jnp.float32)   # x  @ W1   -> (TB, H1)
    p2 = jnp.dot(h2_lhs, w2t_ref[...], preferred_element_type=jnp.float32)      # h2 @ W2^T -> (TB, H1)
    p3 = jnp.dot(h2_lhs, w3_ref[...], preferred_element_type=jnp.float32)       # h2 @ W3   -> (TB, OUT)

    # Energy, with the linear (bias) and 0.5*lam*L2 terms fused into the same
    # elementwise chain / reduce as the bilinear terms:
    #   E = sum(h1*(0.5lam*h1 - xW1 - W2h2 - b1))
    #     + sum(h2*(0.5lam*h2 - b2))
    #     + sum( y*(0.5lam*y  - h2W3 - b3))        [+ 0.5*beta*||t - y||^2]
    e = jnp.sum(h1 * (half_lam * h1 - p1 - p2 - b1_ref[...]))
    e = e + jnp.sum(h2 * (half_lam * h2 - b2_ref[...]))
    e = e + jnp.sum(y * (half_lam * y - p3 - b3_ref[...]))
    if nudge:
        d = t_ref[...] - y
        e = e + (0.5 * sc_ref[1]) * jnp.sum(d * d)

    # Independent, lane-dense per-tile output block (parallel-safe on v7x).
    out_ref[...] = jnp.full((1, 1, out_ref.shape[-1]), e, dtype=jnp.float32)


class HopfieldEnergyPallas:
    """Pallas TPU equivalent of the PyTorch HopfieldEnergy module."""

    def __init__(self, params, input_size, hidden1_size, hidden2_size,
                 output_size, lam=1.0, matmul_dtype=jnp.bfloat16, batch_tile=512):
        self.lam = float(lam)
        self.matmul_dtype = matmul_dtype
        self.batch_tile = int(batch_tile)
        self.sizes = (input_size, hidden1_size, hidden2_size, output_size)

        w1, b1, w2, b2, w3, b3 = params
        # Weights stored compact (no 128-padding, no block-diagonal zeros).
        self.W1 = jnp.asarray(w1, jnp.float32).astype(matmul_dtype)       # (IN, H1)
        self.W2T = jnp.asarray(w2, jnp.float32).T.astype(matmul_dtype)    # (H2, H1)
        self.W3 = jnp.asarray(w3, jnp.float32).astype(matmul_dtype)       # (H2, OUT)
        self.b1 = jnp.asarray(b1, jnp.float32).reshape(1, hidden1_size)
        self.b2 = jnp.asarray(b2, jnp.float32).reshape(1, hidden2_size)
        self.b3 = jnp.asarray(b3, jnp.float32).reshape(1, output_size)

    def __call__(self, x, h1, h2, y, target=None, beta=None):
        nudge = target is not None
        if nudge and beta is None:
            raise ValueError("beta must be provided when target is given")

        IN, H1, H2, OUT = self.sizes
        B = x.shape[0]
        TB = _round_up(min(self.batch_tile, _round_up(B, _SUBLANES)), _SUBLANES)
        Bp = _round_up(B, TB)
        n_tiles = Bp // TB

        def pad_b(a, dtype=jnp.float32):
            a = a.astype(dtype)
            return jnp.pad(a, ((0, Bp - B), (0, 0))) if Bp != B else a

        # x is only ever an MXU LHS -> pre-cast once in the wrapper (halves its
        # DMA bytes).  h1/h2/y stay f32 (they feed VPU math); h2 gets a single
        # in-kernel cast for its two dots so it is streamed from HBM only once.
        xq = pad_b(x, self.matmul_dtype)
        h1f, h2f, yf = pad_b(h1), pad_b(h2), pad_b(y)
        scalars = jnp.array([self.lam, float(beta) if nudge else 0.0], jnp.float32)

        inputs = [scalars, xq, h1f, h2f, yf]
        in_specs = [
            pl.BlockSpec(memory_space=pltpu.MemorySpace.SMEM),        # lam, beta
            pl.BlockSpec((TB, IN), lambda i: (i, 0)),
            pl.BlockSpec((TB, H1), lambda i: (i, 0)),
            pl.BlockSpec((TB, H2), lambda i: (i, 0)),
            pl.BlockSpec((TB, OUT), lambda i: (i, 0)),
        ]
        if nudge:
            inputs.append(pad_b(target))
            in_specs.append(pl.BlockSpec((TB, OUT), lambda i: (i, 0)))
        inputs += [self.W1, self.W2T, self.W3, self.b1, self.b2, self.b3]
        in_specs += [
            pl.BlockSpec((IN, H1), lambda i: (0, 0)),   # resident across grid
            pl.BlockSpec((H2, H1), lambda i: (0, 0)),
            pl.BlockSpec((H2, OUT), lambda i: (0, 0)),
            pl.BlockSpec((1, H1), lambda i: (0, 0)),
            pl.BlockSpec((1, H2), lambda i: (0, 0)),
            pl.BlockSpec((1, OUT), lambda i: (0, 0)),
        ]

        kernel = functools.partial(_hopfield_energy_kernel, nudge=nudge)

        # VMEM budget: resident weights + double-buffered activation tiles,
        # capped below the physical capacity of the current chip (v7x: 64 MiB).
        itm = jnp.dtype(self.matmul_dtype).itemsize
        w_bytes = (IN * H1 + H2 * H1 + H2 * OUT) * itm + (H1 + H2 + OUT) * 4
        act_bytes = TB * (IN * itm + (H1 + H2 + OUT + (OUT if nudge else 0)) * 4)
        need = w_bytes + 2 * act_bytes + 2 * _LANES * 4
        vmem_limit = int(min(int(0.9 * _vmem_capacity_bytes()),
                             max(8 * 2 ** 20, 4 * need)))

        out = pl.pallas_call(
            kernel,
            grid=(n_tiles,),
            in_specs=in_specs,
            out_specs=pl.BlockSpec((1, 1, _LANES), lambda i: (i, 0, 0)),
            out_shape=jax.ShapeDtypeStruct((n_tiles, 1, _LANES), jnp.float32),
            compiler_params=pltpu.CompilerParams(
                dimension_semantics=("parallel",),   # megacore-safe on v7x
                vmem_limit_bytes=vmem_limit),
        )(*inputs)
        # Tiny final reduction over independent per-tile partial energies.
        return jnp.sum(out[:, 0, 0])


def _reference(params, x, h1, h2, y, target=None, beta=None, lam=1.0):
    """Pure-JAX reference mirroring the PyTorch forward."""
    w1, b1, w2, b2, w3, b3 = params
    e1 = -(jnp.einsum('bi,ij,bj->b', x, w1, h1) + jnp.sum(h1 * b1, axis=1))
    e2 = -(jnp.einsum('bi,ij,bj->b', h1, w2, h2) + jnp.sum(h2 * b2, axis=1))
    e3 = -(jnp.einsum('bi,ij,bj->b', h2, w3, y) + jnp.sum(y * b3, axis=1))
    l2 = (h1 ** 2).sum(1) + (h2 ** 2).sum(1) + (y ** 2).sum(1)
    e = e1 + e2 + e3 + lam * 0.5 * l2
    if target is not None:
        e = e + (beta * 0.5 * (target - y) ** 2).sum(1)
    return e.sum()


def init_params(key, input_size, hidden1_size, hidden2_size, output_size):
    """Deterministic parameter init (shapes match the nn.Module)."""
    ks = jax.random.split(key, 6)
    # nn.Bilinear(in1, in2, 1) weight[0] has shape (in1, in2); nn.Linear(h, 1)
    # weight has shape (1, h). Values are synthetic (uniform), not a checkpoint.
    w1 = jax.random.uniform(ks[0], (input_size, hidden1_size), jnp.float32, -0.25, 0.25)
    b1 = jax.random.uniform(ks[1], (1, hidden1_size), jnp.float32, -0.25, 0.25)
    w2 = jax.random.uniform(ks[2], (hidden1_size, hidden2_size), jnp.float32, -0.25, 0.25)
    b2 = jax.random.uniform(ks[3], (1, hidden2_size), jnp.float32, -0.25, 0.25)
    w3 = jax.random.uniform(ks[4], (hidden2_size, output_size), jnp.float32, -0.25, 0.25)
    b3 = jax.random.uniform(ks[5], (1, output_size), jnp.float32, -0.25, 0.25)
    return (w1, b1, w2, b2, w3, b3)


if __name__ == "__main__":
    B, IN, H1, H2, OUT = 2, 16, 32, 32, 8
    beta, lam = 0.5, 1.0

    key = jax.random.PRNGKey(0)
    kprm, kx, kh1, kh2, ky, kt = jax.random.split(key, 6)

    params = init_params(kprm, IN, H1, H2, OUT)
    x = jax.random.normal(kx, (B, IN), jnp.float32)
    h1 = jax.random.normal(kh1, (B, H1), jnp.float32)
    h2 = jax.random.normal(kh2, (B, H2), jnp.float32)
    y = jax.random.normal(ky, (B, OUT), jnp.float32)
    target = jax.random.normal(kt, (B, OUT), jnp.float32)

    ref_free = _reference(params, x, h1, h2, y, lam=lam)
    ref_nudged = _reference(params, x, h1, h2, y, target=target, beta=beta, lam=lam)

    # f32 MXU-operand variant: tight-tolerance validation of both phases.
    model_f32 = HopfieldEnergyPallas(params, IN, H1, H2, OUT, lam=lam,
                                     matmul_dtype=jnp.float32)
    e_free = model_f32(x, h1, h2, y)
    jax.block_until_ready(e_free)
    assert jnp.allclose(e_free, ref_free, rtol=1e-5, atol=1e-4), (e_free, ref_free)

    e_nudged = model_f32(x, h1, h2, y, target=target, beta=beta)
    jax.block_until_ready(e_nudged)
    assert jnp.allclose(e_nudged, ref_nudged, rtol=1e-5, atol=1e-4), (e_nudged, ref_nudged)

    # Default (bf16 MXU operands, f32 accumulation) — the recommended fast path.
    model = HopfieldEnergyPallas(params, IN, H1, H2, OUT, lam=lam)
    e_bf16_free = model(x, h1, h2, y)
    jax.block_until_ready(e_bf16_free)
    assert jnp.allclose(e_bf16_free, ref_free, rtol=3e-2, atol=5e-1), (e_bf16_free, ref_free)

    e_bf16 = model(x, h1, h2, y, target=target, beta=beta)
    jax.block_until_ready(e_bf16)
    assert jnp.allclose(e_bf16, ref_nudged, rtol=3e-2, atol=5e-1), (e_bf16, ref_nudged)

    print("KERNEL_OK")
</pallas_src>

<mosaic_0001>
module attributes {stable_mosaic.version = 11 : i64} {
  func.func @_hopfield_energy_kernel(%arg0: i32, %arg1: memref<2xf32, #tpu.memory_space<smem>>, %arg2: memref<8x16xf32, #tpu.memory_space<vmem>>, %arg3: memref<8x32xf32, #tpu.memory_space<vmem>>, %arg4: memref<8x32xf32, #tpu.memory_space<vmem>>, %arg5: memref<8x8xf32, #tpu.memory_space<vmem>>, %arg6: memref<16x32xf32, #tpu.memory_space<vmem>>, %arg7: memref<32x32xf32, #tpu.memory_space<vmem>>, %arg8: memref<32x8xf32, #tpu.memory_space<vmem>>, %arg9: memref<1x32xf32, #tpu.memory_space<vmem>>, %arg10: memref<1x32xf32, #tpu.memory_space<vmem>>, %arg11: memref<1x8xf32, #tpu.memory_space<vmem>>, %arg12: memref<1x1x128xf32, #tpu.memory_space<vmem>>) attributes {dimension_semantics = [#tpu.dimension_semantics<parallel>], iteration_bounds = array<i64: 1>, scalar_prefetch = 0 : i64, scratch_operands = 0 : i64, tpu.core_type = #tpu.core_type<tc>, window_params = [{transform_indices = @transform_0, window_bounds = array<i64: 2>}, {transform_indices = @transform_1, window_bounds = array<i64: 8, 16>}, {transform_indices = @transform_2, window_bounds = array<i64: 8, 32>}, {transform_indices = @transform_3, window_bounds = array<i64: 8, 32>}, {transform_indices = @transform_4, window_bounds = array<i64: 8, 8>}, {pipeline_mode = #tpu.pipeline_mode<synchronous>, transform_indices = @transform_5, window_bounds = array<i64: 16, 32>}, {pipeline_mode = #tpu.pipeline_mode<synchronous>, transform_indices = @transform_6, window_bounds = array<i64: 32, 32>}, {pipeline_mode = #tpu.pipeline_mode<synchronous>, transform_indices = @transform_7, window_bounds = array<i64: 32, 8>}, {pipeline_mode = #tpu.pipeline_mode<synchronous>, transform_indices = @transform_8, window_bounds = array<i64: 1, 32>}, {pipeline_mode = #tpu.pipeline_mode<synchronous>, transform_indices = @transform_9, window_bounds = array<i64: 1, 32>}, {pipeline_mode = #tpu.pipeline_mode<synchronous>, transform_indices = @transform_10, window_bounds = array<i64: 1, 8>}, {transform_indices = @transform_11, window_bounds = array<i64: 1, 1, 128>}]} {
    %c0 = arith.constant 0 : index
    %0 = memref.load %arg1[%c0] : memref<2xf32, #tpu.memory_space<smem>>
    %cst = arith.constant 5.000000e-01 : f32
    %1 = arith.mulf %cst, %0 : f32
    %c0_0 = arith.constant 0 : index
    %c0_1 = arith.constant 0 : index
    %2 = vector.load %arg3[%c0_0, %c0_1] : memref<8x32xf32, #tpu.memory_space<vmem>>, vector<8x32xf32>
    %c0_2 = arith.constant 0 : index
    %c0_3 = arith.constant 0 : index
    %3 = vector.load %arg4[%c0_2, %c0_3] : memref<8x32xf32, #tpu.memory_space<vmem>>, vector<8x32xf32>
    %c0_4 = arith.constant 0 : index
    %c0_5 = arith.constant 0 : index
    %4 = vector.load %arg5[%c0_4, %c0_5] : memref<8x8xf32, #tpu.memory_space<vmem>>, vector<8x8xf32>
    %c0_6 = arith.constant 0 : index
    %c0_7 = arith.constant 0 : index
    %5 = vector.load %arg2[%c0_6, %c0_7] : memref<8x16xf32, #tpu.memory_space<vmem>>, vector<8x16xf32>
    %c0_8 = arith.constant 0 : index
    %c0_9 = arith.constant 0 : index
    %6 = vector.load %arg6[%c0_8, %c0_9] : memref<16x32xf32, #tpu.memory_space<vmem>>, vector<16x32xf32>
    %cst_10 = arith.constant dense<0.000000e+00> : vector<8x32xf32>
    %7 = tpu.matmul %5, %6, %cst_10 {dimension_numbers = #tpu.dot_dimension_numbers<[1], [0], [0], [1], [0, 0, 1, 1], [], []>} : vector<8x16xf32>, vector<16x32xf32>, vector<8x32xf32> -> vector<8x32xf32>
    %c0_11 = arith.constant 0 : index
    %c0_12 = arith.constant 0 : index
    %8 = vector.load %arg7[%c0_11, %c0_12] : memref<32x32xf32, #tpu.memory_space<vmem>>, vector<32x32xf32>
    %cst_13 = arith.constant dense<0.000000e+00> : vector<8x32xf32>
    %9 = tpu.matmul %3, %8, %cst_13 {dimension_numbers = #tpu.dot_dimension_numbers<[1], [0], [0], [1], [0, 0, 1, 1], [], []>} : vector<8x32xf32>, vector<32x32xf32>, vector<8x32xf32> -> vector<8x32xf32>
    %c0_14 = arith.constant 0 : index
    %c0_15 = arith.constant 0 : index
    %10 = vector.load %arg8[%c0_14, %c0_15] : memref<32x8xf32, #tpu.memory_space<vmem>>, vector<32x8xf32>
    %cst_16 = arith.constant dense<0.000000e+00> : vector<8x8xf32>
    %11 = tpu.matmul %3, %10, %cst_16 {dimension_numbers = #tpu.dot_dimension_numbers<[1], [0], [0], [1], [0, 0, 1, 1], [], []>} : vector<8x32xf32>, vector<32x8xf32>, vector<8x8xf32> -> vector<8x8xf32>
    %12 = vector.broadcast %1 : f32 to vector<8x32xf32>
    %13 = arith.mulf %12, %2 : vector<8x32xf32>
    %14 = arith.subf %13, %7 : vector<8x32xf32>
    %15 = arith.subf %14, %9 : vector<8x32xf32>
    %c0_17 = arith.constant 0 : index
    %c0_18 = arith.constant 0 : index
    %16 = vector.load %arg9[%c0_17, %c0_18] : memref<1x32xf32, #tpu.memory_space<vmem>>, vector<1x32xf32>
    %17 = vector.broadcast %16 : vector<1x32xf32> to vector<8x32xf32>
    %18 = arith.subf %15, %17 : vector<8x32xf32>
    %19 = arith.mulf %2, %18 : vector<8x32xf32>
    %20 = vector.shape_cast %19 : vector<8x32xf32> to vector<1x8x32xf32>
    %cst_19 = arith.constant dense<0.000000e+00> : vector<1xf32>
    %21 = vector.multi_reduction <add>, %20, %cst_19 [1, 2] : vector<1x8x32xf32> to vector<1xf32>
    %22 = vector.shape_cast %21 : vector<1xf32> to vector<1x1x1xf32>
    %23 = vector.extract %22[0, 0, 0] : f32 from vector<1x1x1xf32>
    %24 = vector.broadcast %1 : f32 to vector<8x32xf32>
    %25 = arith.mulf %24, %3 : vector<8x32xf32>
    %c0_20 = arith.constant 0 : index
    %c0_21 = arith.constant 0 : index
    %26 = vector.load %arg10[%c0_20, %c0_21] : memref<1x32xf32, #tpu.memory_space<vmem>>, vector<1x32xf32>
    %27 = vector.broadcast %26 : vector<1x32xf32> to vector<8x32xf32>
    %28 = arith.subf %25, %27 : vector<8x32xf32>
    %29 = arith.mulf %3, %28 : vector<8x32xf32>
    %30 = vector.shape_cast %29 : vector<8x32xf32> to vector<1x8x32xf32>
    %cst_22 = arith.constant dense<0.000000e+00> : vector<1xf32>
    %31 = vector.multi_reduction <add>, %30, %cst_22 [1, 2] : vector<1x8x32xf32> to vector<1xf32>
    %32 = vector.shape_cast %31 : vector<1xf32> to vector<1x1x1xf32>
    %33 = vector.extract %32[0, 0, 0] : f32 from vector<1x1x1xf32>
    %34 = arith.addf %23, %33 : f32
    %35 = vector.broadcast %1 : f32 to vector<8x8xf32>
    %36 = arith.mulf %35, %4 : vector<8x8xf32>
    %37 = arith.subf %36, %11 : vector<8x8xf32>
    %c0_23 = arith.constant 0 : index
    %c0_24 = arith.constant 0 : index
    %38 = vector.load %arg11[%c0_23, %c0_24] : memref<1x8xf32, #tpu.memory_space<vmem>>, vector<1x8xf32>
    %39 = vector.broadcast %38 : vector<1x8xf32> to vector<8x8xf32>
    %40 = arith.subf %37, %39 : vector<8x8xf32>
    %41 = arith.mulf %4, %40 : vector<8x8xf32>
    %42 = vector.shape_cast %41 : vector<8x8xf32> to vector<1x8x8xf32>
    %cst_25 = arith.constant dense<0.000000e+00> : vector<1xf32>
    %43 = vector.multi_reduction <add>, %42, %cst_25 [1, 2] : vector<1x8x8xf32> to vector<1xf32>
    %44 = vector.shape_cast %43 : vector<1xf32> to vector<1x1x1xf32>
    %45 = vector.extract %44[0, 0, 0] : f32 from vector<1x1x1xf32>
    %46 = arith.addf %34, %45 : f32
    %47 = vector.broadcast %46 : f32 to vector<1x1x128xf32>
    %c0_26 = arith.constant 0 : index
    %c0_27 = arith.constant 0 : index
    %c0_28 = arith.constant 0 : index
    %48 = vector.load %arg12[%c0_26, %c0_27, %c0_28] : memref<1x1x128xf32, #tpu.memory_space<vmem>>, vector<1x1x128xf32>
    tpu.vector_store %arg12[%c0_26, %c0_27, %c0_28], %47 {strides = array<i32>} : memref<1x1x128xf32, #tpu.memory_space<vmem>>, vector<1x1x128xf32>,
    return
  }
  func.func @transform_0(%arg0: i32) -> i32 {
    %c0_i32 = arith.constant 0 : i32
    %c0_i32_0 = arith.constant 0 : i32
    return %c0_i32 : i32
  }
  func.func @transform_1(%arg0: i32) -> (i32, i32) {
    %c0_i32 = arith.constant 0 : i32
    %c0_i32_0 = arith.constant 0 : i32
    return %arg0, %c0_i32 : i32, i32
  }
  func.func @transform_2(%arg0: i32) -> (i32, i32) {
    %c0_i32 = arith.constant 0 : i32
    %c0_i32_0 = arith.constant 0 : i32
    return %arg0, %c0_i32 : i32, i32
  }
  func.func @transform_3(%arg0: i32) -> (i32, i32) {
    %c0_i32 = arith.constant 0 : i32
    %c0_i32_0 = arith.constant 0 : i32
    return %arg0, %c0_i32 : i32, i32
  }
  func.func @transform_4(%arg0: i32) -> (i32, i32) {
    %c0_i32 = arith.constant 0 : i32
    %c0_i32_0 = arith.constant 0 : i32
    return %arg0, %c0_i32 : i32, i32
  }
  func.func @transform_5(%arg0: i32) -> (i32, i32) {
    %c0_i32 = arith.constant 0 : i32
    %c0_i32_0 = arith.constant 0 : i32
    %c0_i32_1 = arith.constant 0 : i32
    return %c0_i32, %c0_i32_0 : i32, i32
  }
  func.func @transform_6(%arg0: i32) -> (i32, i32) {
    %c0_i32 = arith.constant 0 : i32
    %c0_i32_0 = arith.constant 0 : i32
    %c0_i32_1 = arith.constant 0 : i32
    return %c0_i32, %c0_i32_0 : i32, i32
  }
  func.func @transform_7(%arg0: i32) -> (i32, i32) {
    %c0_i32 = arith.constant 0 : i32
    %c0_i32_0 = arith.constant 0 : i32
    %c0_i32_1 = arith.constant 0 : i32
    return %c0_i32, %c0_i32_0 : i32, i32
  }
  func.func @transform_8(%arg0: i32) -> (i32, i32) {
    %c0_i32 = arith.constant 0 : i32
    %c0_i32_0 = arith.constant 0 : i32
    %c0_i32_1 = arith.constant 0 : i32
    return %c0_i32, %c0_i32_0 : i32, i32
  }
  func.func @transform_9(%arg0: i32) -> (i32, i32) {
    %c0_i32 = arith.constant 0 : i32
    %c0_i32_0 = arith.constant 0 : i32
    %c0_i32_1 = arith.constant 0 : i32
    return %c0_i32, %c0_i32_0 : i32, i32
  }
  func.func @transform_10(%arg0: i32) -> (i32, i32) {
    %c0_i32 = arith.constant 0 : i32
    %c0_i32_0 = arith.constant 0 : i32
    %c0_i32_1 = arith.constant 0 : i32
    return %c0_i32, %c0_i32_0 : i32, i32
  }
  func.func @transform_11(%arg0: i32) -> (i32, i32, i32) {
    %c0_i32 = arith.constant 0 : i32
    %c0_i32_0 = arith.constant 0 : i32
    %c0_i32_1 = arith.constant 0 : i32
    return %arg0, %c0_i32, %c0_i32_0 : i32, i32, i32
  }
}

</mosaic_0001>

<bundles_post_ra>
// kernel: tpu_custom_call.1
= control target key start
LH: loop header
LB: loop body
LE: loop exit
PB: predicated region body
PF: predicated region fallthrough
CT: control target
= control target key end

     0   :  { %16 = vsyncpa [#allocation5], 0  ;;  %s561_s0 = inlined_call_operand.vmem [shape: f32[2], index: 0, kind: input, shape index: {}]   ;;  %s562_s1 = inlined_call_operand.vmem [shape: f32[8,16], index: 1, kind: input, shape index: {}]   ;;  %s563_s2 = inlined_call_operand.hbm [shape: f32[8,32], index: 2, kind: input, shape index: {}]   ;;  %s564_s3 = inlined_call_operand.hbm [shape: f32[8,32], index: 3, kind: input, shape index: {}]   ;;  %s565_s4 = inlined_call_operand.hbm [shape: f32[8,8], index: 4, kind: input, shape index: {}]   ;;  %s566_s5 = inlined_call_operand.hbm [shape: f32[16,32], index: 5, kind: input, shape index: {}]   ;;  %s567_s6 = inlined_call_operand.vmem [shape: f32[32,32], index: 6, kind: input, shape index: {}]   ;;  %s568_s7 = inlined_call_operand.vmem [shape: f32[32,8], index: 7, kind: input, shape index: {}]   ;;  %s569_s8 = inlined_call_operand.vmem [shape: f32[1,32], index: 8, kind: input, shape index: {}]   ;;  %s570_s9 = inlined_call_operand.vmem [shape: f32[1,32], index: 9, kind: input, shape index: {}]   ;;  %s571_s10 = inlined_call_operand.vmem [shape: f32[1,8], index: 10, kind: input, shape index: {}]   ;;  %s572_s11 = inlined_call_operand.hbm [shape: f32[1,1,128], index: 11, kind: output, shape index: {}]  }
   0x1   :  { %17 = vsyncpa [#allocation3], 0 }
   0x2   :  { %18 = vsyncpa [#allocation8], 0 }
   0x3   :  { %19 = vsyncpa [#allocation11], 0  ;;  %s48_s19 = sshll.u32 %s564_s3, 4  ;;  %s49_s19 = int_to_ptr.hbm [resolvable:$true] %s48_s19 }
   0x4   :  { %20 = vsyncpa [#allocation4], 0  ;;  %s435_s20 = smov [#allocation7]   ;;  %s26_s24 = sshll.u32 %s561_s0, 4  ;;  %s27_s24 = int_to_ptr.vmem [resolvable:$true] %s26_s24 }
   0x5   :  { %s50_s21 = sshll.u32 %s435_s20, 4  ;;  %s436_s25 = smov [#allocation2]   ;;  %s51_s21 = int_to_ptr.vmem [resolvable:$true] %s50_s21 }
   0x6   :  { %53 = dma.hbm_to_vmem [thread:$0]  %s49_s19, 128, %s51_s21, [#allocation8]  }
   0x7   :  { %29 = dma.vmem_to_smem %s27_s24, 16, %s436_s25, [#allocation5]  }
   0x8   :  { %s37_s28 = sshll.u32 %s563_s2, 4  ;;  %s437_s29 = smov [#allocation6]   ;;  %s38_s28 = int_to_ptr.hbm [resolvable:$true] %s37_s28 }
   0x9   :  { %s39_s3 = sshll.u32 %s437_s29, 4  ;;  %s59_s13 = sshll.u32 %s565_s4, 4  ;;  %s40_s3 = int_to_ptr.vmem [resolvable:$true] %s39_s3  ;;  %s60_s13 = int_to_ptr.hbm [resolvable:$true] %s59_s13 }
   0xa   :  { %42 = dma.hbm_to_vmem [thread:$0]  %s38_s28, 128, %s40_s3, [#allocation3]  }
   0xb   :  { %s438_s14 = smov [#allocation9]   ;;  %s69_s17 = sshll.u32 %s566_s5, 4  ;;  %s70_s17 = int_to_ptr.hbm [resolvable:$true] %s69_s17 }
   0xc   :  { %s61_s0 = sshll.u32 %s438_s14, 4  ;;  %s439_s2 = smov [#allocation10]   ;;  %s62_s0 = int_to_ptr.vmem [resolvable:$true] %s61_s0 }
   0xd   :  { %64 = dma.hbm_to_vmem [thread:$0]  %s60_s13, 128, %s62_s0, [#allocation8]  }
   0xe   :  { %s71_s18 = sshll.u32 %s439_s2, 4  ;;  %s440_s19 = smov 128   ;;  %s72_s18 = int_to_ptr.vmem [resolvable:$true] %s71_s18 }
   0xf   :  { %s441_s20 = smov 8  }
  0x10   :  { %77 = dma.hbm_to_vmem [thread:$0]  %s70_s17, 256, %s72_s18, [#allocation11], %s440_s19, %s440_s19, %s441_s20  }
  0x11   :  { %425 = dma.done.wait [#allocation5], 16  }
  0x12   :  { %426 = vsyncadd [#allocation5], 4294967280 }
  0x13   :  { %427 = dma.done.wait [#allocation3], 128  }
  0x14   :  { %428 = vsyncadd [#allocation3], 4294967168 }
  0x15   :  { %429 = dma.done.wait [#allocation8], 256  }
  0x16   :  { %430 = vsyncadd [#allocation8], 4294967040 }
  0x17   :  { %431 = dma.done.wait [#allocation11], 256  }
  0x18   :  { %432 = vsyncadd [#allocation11], 4294967040 }
  0x19   :  { %108 = sfence }
  0x1a   :  { %v144_v0 = vld [vmem:[%s567_s6 + $0x18] sm:$0xff]  ;;  %v116_v2 = vld [vmem:[#allocation10 + $0x8] sm:$0xff]  ;;  %v143_v3 = vld [vmem:[%s567_s6 + $0x10] sm:$0xff]  ;;  %vm117_vm0 = vcmask 130048   ;;  %vm145_vm1 = vcmask 261120   ;;  %vm239_vm2 = vcmask 64512  }
  0x1b   :  { %v172_v1 = vld [vmem:[%s568_s7 + $0x18] sm:$0xff]  ;;  %161 = vmatpush.msra.mxu1 %v144_v0  ;;  %v171_v4 = vld [vmem:[%s568_s7 + $0x10] sm:$0xff]  ;;  %135 = vmatpush.msra.mxu0 %v116_v2  ;;  %v142_v6 = vld [vmem:[%s567_s6 + $0x8] sm:$0xff]  ;;  %s260_s22 = sshll.u32 %s572_s11, 4  ;;  %s261_s22 = int_to_ptr.hbm [resolvable:$true] %s260_s22 }
  0x1c   :  { %185 = vmatpush.msra.mxu2 %v172_v1  ;;  %v115_v5 = vld [vmem:[#allocation10] sm:$0xff]  ;;  %v170_v7 = vld [vmem:[%s568_s7 + $0x8] sm:$0xff]  ;;  %v114_v8 = vld [vmem:[%s562_s1] sm:$0xff]  ;;  %s109_s1 = sld [smem:[#allocation2]] }
  0x1d   :  { %162 = vmatpush.msra.mxu1 %v143_v3  ;;  %v141_v9 = vld [vmem:[%s567_s6] sm:$0xff]  ;;  %136 = vmatpush.msra.mxu0 %v115_v5  ;;  %v112_v11 = vld [vmem:[#allocation7] sm:$0xff]  ;;  %v113_v19 = vld [vmem:[#allocation9] sm:$0xff] }
  0x1e   :  { %186 = vmatpush.msra.mxu2 %v171_v4  ;;  %v169_v10 = vld [vmem:[%s568_s7] sm:$0xff]  ;;  %273 = vmatmul.msk.f32.vlgmr.msra.gmra.mxu0 %vm117_vm0, %v114_v8 }
  0x1f   :  { %163 = vmatpush.msra.mxu1 %v142_v6  ;;  %v111_v12 = vld [vmem:[#allocation6] sm:$0xff] }
  0x20   :  { %187 = vmatpush.msra.mxu2 %v170_v7  ;;  %v290_v17 = vld [vmem:[%s569_s8] ss:$0 sm:$0xff] }
  0x21   :  { %164 = vmatpush.msra.mxu1 %v141_v9  ;;  %v292_v22 = vld [vmem:[%s570_s9] ss:$0 sm:$0xff] }
  0x22   :  { %188 = vmatpush.msra.mxu2 %v169_v10  ;;  %274 = vmatmul.msk.f32.vlgmr.msra.gmra.mxu1 %vm145_vm1, %v112_v11  ;;  %s110_s16 = smul.f32 0.5, %s109_s1  ;;  %v291_v25 = vld [vmem:[%s571_s10] ss:$0 sm:$0xff]  ;;  %s442_s10 = smov [#allocation12]  }
  0x23   :  { %275 = vmatmul.msk.f32.vlgmr.msra.gmra.mxu2 %vm145_vm1, %v112_v11  ;;  %s258_s20 = sshll.u32 %s442_s10, 4  ;;  %s259_s20 = int_to_ptr.vmem [resolvable:$true] %s258_s20 }
  0x24   :  { %v193_v13 = vstv %s110_s16 }
  0x25   :  { %v194_v14 = vmul.f32 %v193_v13, %v111_v12  ;;  %v213_v21 = vmul.f32 %v193_v13, %v112_v11  ;;  %v231_v24 = vmul.f32 %v193_v13, %v113_v19 }
  0x27   :  { %v218_v27 = vsub.f32 %v213_v21, %v292_v22 }
  0x29   :  { %v219_v32 = vmul.f32 %v218_v27, %v112_v11 }
  0x2b   :  { %v220_v35 = vsel %vm145_vm1, %v219_v32, 0.0 }
  0x9b   :  { %v138_v15 = vpop.f32.mrf.mxu0 }
  0x9c   :  { %v195_v16 = vsub.f32 %v194_v14, %v138_v15 }
  0x9f   :  { %v166_v18 = vpop.f32.mrf.mxu1 }
  0xa0   :  { %v196_v20 = vsub.f32 %v195_v16, %v166_v18 }
  0xa2   :  { %v201_v23 = vsub.f32 %v196_v20, %v290_v17 }
  0xa4   :  { %v202_v26 = vmul.f32 %v201_v23, %v111_v12 }
  0xa6   :  { %v190_v28 = vpop.f32.mrf.mxu2  ;;  %v203_v30 = vsel %vm145_vm1, %v202_v26, 0.0 }
  0xa7   :  { %v232_v29 = vsub.f32 %v231_v24, %v190_v28  ;;  %204 = vadd.xlane.f32.xlu0 %v203_v30 }
  0xa9   :  { %v237_v31 = vsub.f32 %v232_v29, %v291_v25 }
  0xab   :  { %v238_v33 = vmul.f32 %v237_v31, %v113_v19 }
  0xad   :  { %v240_v34 = vsel %vm239_vm2, %v238_v33, 0.0 }
  0xae   :  { %241 = vadd.xlane.f32.xlu1 %v240_v34 }
  0xaf   :  { %221 = vadd.xlane.f32.xlu0 %v220_v35 }
 0x11a   :  { %v205_v36 = vpop.xlane.xlu0 %204 }
 0x11b   :  { %v206_v37 = vrot.slane %v205_v36, 4 }
 0x11d   :  { %v207_v38 = vadd.f32 %v206_v37, %v205_v36 }
 0x11f   :  { %v208_v39 = vrot.slane %v207_v38, 2 }
 0x121   :  { %v242_v40 = vpop.xlane.xlu1 %241  ;;  %v209_v42 = vadd.f32 %v208_v39, %v207_v38 }
 0x122   :  { %v243_v41 = vrot.slane %v242_v40, 4  ;;  %v222_v43 = vpop.xlane.xlu0 %221 }
 0x123   :  { %v223_v45 = vrot.slane %v222_v43, 4  ;;  %v210_v46 = vrot.slane %v209_v42, 1 }
 0x124   :  { %v244_v44 = vadd.f32 %v243_v41, %v242_v40 }
 0x125   :  { %v224_v48 = vadd.f32 %v223_v45, %v222_v43  ;;  %v211_v49 = vadd.f32 %v210_v46, %v209_v42 }
 0x126   :  { %v245_v47 = vrot.slane %v244_v44, 2 }
 0x127   :  { %v225_v51 = vrot.slane %v224_v48, 2  ;;  %276 = vpush %v211_v49 }
 0x128   :  { %v246_v50 = vadd.f32 %v245_v47, %v244_v44 }
 0x129   :  { %v226_v52 = vadd.f32 %v225_v51, %v224_v48 }
 0x12a   :  { %v247_v53 = vrot.slane %v246_v50, 1 }
 0x12b   :  { %v227_v54 = vrot.slane %v226_v52, 1 }
 0x12c   :  { %v248_v56 = vadd.f32 %v247_v53, %v246_v50 }
 0x12d   :  { %v228_v55 = vadd.f32 %v227_v54, %v226_v52 }
 0x12f   :  { %278 = vpush %v228_v55 }
 0x130   :  { %280 = vpush %v248_v56 }
 0x158   :  { %s277_s8 = spop %276 }
 0x160   :  { %s279_s9 = spop %278 }
 0x161   :  { %s230_s4 = sadd.f32 %s279_s9, %s277_s8  ;;  %s281_s23 = spop %280 }
 0x163   :  { %s250_s24 = sadd.f32 %s281_s23, %s230_s4 }
 0x165   :  { %v251_v57 = vstv %s250_s24 }
 0x166   :  { %252 = vst [vmem:[#allocation12] sm:$0x1] %v251_v57 }
 0x167   :  { %263 = dma.vmem_to_hbm [thread:$0]  %s259_s20, 16, %s261_s22, [#allocation4]  }
 0x168   :  { %433 = dma.done.wait [#allocation4], 16  }
 0x169   :  { %434 = vsyncadd [#allocation4], 4294967280 }
 0x16a   :  { %268 = vsyncpa [#allocation3], 1 }
 0x16b   :  { %269 = vsyncpa [#allocation8], 1 }
 0x16c   :  { %270 = vsyncpa [#allocation11], 1 }
 0x16d   :  { %271 = vsyncpa [#allocation4], 1 }
 0x16e   :  { %272 = vsyncpa [#allocation5], 1 }

</bundles_post_ra>
